<compile_context>
chip_gen: v7x
topology: tpu7x:2x2x1
jax: 0.10.0
libtpu: 0.0.40
codegen_flags: <defaults>
</compile_context>

<pallas_src>
import math

import jax
import jax.numpy as jnp
from jax.experimental import pallas as pl
from jax.experimental.pallas import tpu as pltpu


_MAX_DMA_CHUNKS = 4           # a few in-flight DMAs to keep HBM busy on big arrays
_MIN_CHUNK_BYTES = 8 << 20    # don't bother splitting below ~8 MiB per chunk


def _sublane_quantum(dtype) -> int:
    # Rows pack along sublanes for sub-32-bit dtypes: 8 (4B), 16 (2B), 32 (1B).
    return max(8, 32 // jnp.dtype(dtype).itemsize)


def _chunk_bounds(shape, dtype):
    """Static (start, size) splits of dim 0 into a few contiguous DMA chunks.

    Chunk starts are kept on sublane-tile boundaries of the second-minor dim so
    every DMA slice of the (tiled) HBM array stays tile-aligned; small or
    awkward arrays fall back to a single full-array DMA (always safe/optimal).
    """
    rows = shape[0]
    total_bytes = math.prod(shape) * jnp.dtype(dtype).itemsize
    if len(shape) < 2 or total_bytes < 2 * _MIN_CHUNK_BYTES:
        return ((0, rows),)
    q = _sublane_quantum(dtype)
    groups = rows // q
    num = min(_MAX_DMA_CHUNKS, groups, total_bytes // _MIN_CHUNK_BYTES)
    if num < 2:
        return ((0, rows),)
    base, extra = divmod(groups, num)
    bounds = []
    start = 0
    for i in range(num):
        size = (base + (1 if i < extra else 0)) * q
        if i == num - 1:
            size = rows - start  # last chunk absorbs any ragged remainder
        bounds.append((start, size))
        start += size
    return tuple(bounds)


def _make_dma_copy_kernel(bounds):
    """Kernel: HBM->HBM DMA copy of the whole array in a few large chunks."""

    def kernel(x_hbm, o_hbm, sems):
        copies = []
        for idx, (start, size) in enumerate(bounds):  # static Python loop
            cp = pltpu.make_async_copy(
                x_hbm.at[pl.ds(start, size)],
                o_hbm.at[pl.ds(start, size)],
                sems.at[idx],
            )
            cp.start()
            copies.append(cp)
        for cp in copies:
            cp.wait()

    return kernel


def _pallas_copy(x: jax.Array) -> jax.Array:
    """Bit-exact copy of `x` via a Pallas HBM->HBM DMA kernel (same shape/dtype)."""
    if x.size == 0:
        return x
    xr = x if x.ndim >= 1 else jnp.reshape(x, (1,))
    total_bytes = xr.size * jnp.dtype(xr.dtype).itemsize
    bounds = _chunk_bounds(xr.shape, xr.dtype)

    out = pl.pallas_call(
        _make_dma_copy_kernel(bounds),
        out_shape=jax.ShapeDtypeStruct(xr.shape, xr.dtype),
        in_specs=[pl.BlockSpec(memory_space=pl.ANY)],
        out_specs=pl.BlockSpec(memory_space=pl.ANY),
        scratch_shapes=[pltpu.SemaphoreType.DMA((len(bounds),))],
        cost_estimate=pl.CostEstimate(
            flops=0, transcendentals=0, bytes_accessed=2 * total_bytes
        ),
    )(xr)
    return jnp.reshape(out, x.shape)


class Reshape:
    """JAX/Pallas equivalent of monai.networks.layers.simplelayers.Reshape.

    Reshapes input of shape (batch, s0*s1*...*sn) to (batch, s0, s1, ..., sn).

    Note: reshape is metadata-only in XLA; `copy_through_pallas=False` is the
    truly free path (pure `jnp.reshape`).  The default keeps a Pallas HBM->HBM
    DMA identity copy so the kernel is exercised.
    """

    def __init__(self, *shape: int, copy_through_pallas: bool = True) -> None:
        self.shape = (1,) + tuple(shape)
        self.copy_through_pallas = copy_through_pallas

    def __call__(self, x: jax.Array) -> jax.Array:
        out_shape = list(self.shape)
        out_shape[0] = x.shape[0]
        if self.copy_through_pallas:
            x = _pallas_copy(x)
        return jnp.reshape(x, out_shape)


if __name__ == "__main__":
    key = jax.random.PRNGKey(0)
    k1, k2, k3 = jax.random.split(key, 3)

    # Test 1: canonical small case.  Reshape(4, 16, 16): (2, 1024) -> (2, 4, 16, 16).
    layer = Reshape(4, 16, 16)
    batch = 2
    x = jax.random.normal(k1, (batch, 4 * 16 * 16), dtype=jnp.float32)
    y = jax.block_until_ready(layer(x))
    expected = jnp.reshape(x, (batch, 4, 16, 16))
    assert y.shape == (batch, 4, 16, 16), y.shape
    assert y.dtype == x.dtype
    assert bool(jnp.array_equal(y, expected))

    # Test 2: non-(8,128)-aligned size and bf16 dtype — the HBM->HBM DMA path
    # has no lane/sublane tiling requirements, so this works unchanged.
    layer2 = Reshape(3, 5, 7)
    x2 = jax.random.normal(k2, (2, 3 * 5 * 7), dtype=jnp.bfloat16)
    y2 = jax.block_until_ready(layer2(x2))
    assert y2.shape == (2, 3, 5, 7)
    assert y2.dtype == x2.dtype
    assert bool(jnp.array_equal(y2, jnp.reshape(x2, (2, 3, 5, 7))))

    # Test 3: moderately larger case (still a single full-array DMA).
    layer3 = Reshape(16, 64, 64)
    x3 = jax.random.normal(k3, (4, 16 * 64 * 64), dtype=jnp.float32)
    y3 = jax.block_until_ready(layer3(x3))
    assert y3.shape == (4, 16, 64, 64)
    assert bool(jnp.array_equal(y3, jnp.reshape(x3, (4, 16, 64, 64))))

    print("KERNEL_OK")
</pallas_src>

<mosaic_0001>
module attributes {stable_mosaic.version = 11 : i64} {
  func.func @kernel(%arg0: memref<2x1024xf32, #tpu.memory_space<any>>, %arg1: memref<2x1024xf32, #tpu.memory_space<any>>, %arg2: memref<1x!tpu.dma_semaphore, #tpu.memory_space<semaphore_mem>>) attributes {dimension_semantics = [], scalar_prefetch = 0 : i64, scratch_operands = 1 : i64, tpu.core_type = #tpu.core_type<tc>} {
    %c0_i32 = arith.constant 0 : i32
    %c0_i32_0 = arith.constant 0 : i32
    %c0_i32_1 = arith.constant 0 : i32
    %0 = tpu.memref_slice %arg0[%c0_i32_0, %c0_i32_1] : memref<2x1024xf32, #tpu.memory_space<any>> -> memref<2x1024xf32, #tpu.memory_space<any>>
    %c0_i32_2 = arith.constant 0 : i32
    %c0_i32_3 = arith.constant 0 : i32
    %1 = tpu.memref_slice %arg1[%c0_i32_2, %c0_i32_3] : memref<2x1024xf32, #tpu.memory_space<any>> -> memref<2x1024xf32, #tpu.memory_space<any>>
    %2 = tpu.memref_slice %arg2[%c0_i32] : memref<1x!tpu.dma_semaphore, #tpu.memory_space<semaphore_mem>> -> memref<1x!tpu.dma_semaphore, #tpu.memory_space<semaphore_mem>>
    %3 = tpu.memref_squeeze %2 : memref<1x!tpu.dma_semaphore, #tpu.memory_space<semaphore_mem>> -> memref<!tpu.dma_semaphore, #tpu.memory_space<semaphore_mem>>
    tpu.enqueue_dma source(%0 : memref<2x1024xf32, #tpu.memory_space<any>>) target(%1 : memref<2x1024xf32, #tpu.memory_space<any>>) target_semaphore(%3 : memref<!tpu.dma_semaphore, #tpu.memory_space<semaphore_mem>>)
    %c0_i32_4 = arith.constant 0 : i32
    %c0_i32_5 = arith.constant 0 : i32
    %c0_i32_6 = arith.constant 0 : i32
    %4 = tpu.memref_slice %arg0[%c0_i32_5, %c0_i32_6] : memref<2x1024xf32, #tpu.memory_space<any>> -> memref<2x1024xf32, #tpu.memory_space<any>>
    %c0_i32_7 = arith.constant 0 : i32
    %c0_i32_8 = arith.constant 0 : i32
    %5 = tpu.memref_slice %arg1[%c0_i32_7, %c0_i32_8] : memref<2x1024xf32, #tpu.memory_space<any>> -> memref<2x1024xf32, #tpu.memory_space<any>>
    %6 = tpu.memref_slice %arg2[%c0_i32_4] : memref<1x!tpu.dma_semaphore, #tpu.memory_space<semaphore_mem>> -> memref<1x!tpu.dma_semaphore, #tpu.memory_space<semaphore_mem>>
    %7 = tpu.memref_squeeze %6 : memref<1x!tpu.dma_semaphore, #tpu.memory_space<semaphore_mem>> -> memref<!tpu.dma_semaphore, #tpu.memory_space<semaphore_mem>>
    tpu.wait_dma2 semaphore(%7 : memref<!tpu.dma_semaphore, #tpu.memory_space<semaphore_mem>>) src(%4 : memref<2x1024xf32, #tpu.memory_space<any>>) dst(%5 : memref<2x1024xf32, #tpu.memory_space<any>>)
    return
  }
}

</mosaic_0001>

<bundles_post_ra>
// kernel: tpu_custom_call.1
= control target key start
LH: loop header
LB: loop body
LE: loop exit
PB: predicated region body
PF: predicated region fallthrough
CT: control target
= control target key end

     0   :  { %s35_s6 = smov [#allocation2]   ;;  %s36_s7 = smov [#allocation3]   ;;  %s54_s0 = inlined_call_operand.hbm [shape: f32[2,1024], index: 0, kind: input, shape index: {}]   ;;  %s55_s1 = inlined_call_operand.hbm [shape: f32[2,1024], index: 1, kind: output, shape index: {}]  }
   0x1   :  { %s37_s8 = smov 0  }
   0x2   :  { %18 = dma.general %s54_s0, 256, %s55_s1, %s35_s6, %s36_s7, [#allocation4], %s37_s8, 0  }
   0x3   :  { %33 = dma.done.wait [#allocation2], 256 }
   0x4   :  { %34 = vsyncadd [#allocation2], 4294967040 }
   0x5   :  { %23 = vsyncmov [#allocation2] }
   0x8   :  { %s24_s13 = vpop.sfrf %23 }
   0x9   :  { %p29_p0 = scmp.ne.s32.totalorder %s24_s13, 0 }
   0xb   :  { %28 = shalt.err (%p29_p0)  }

</bundles_post_ra>
